<compile_context>
chip_gen: v7x
topology: tpu7x:2x2x1
jax: 0.10.0
libtpu: 0.0.40
codegen_flags: <defaults>
</compile_context>

<pallas_src>
import functools

import jax
import jax.numpy as jnp
from jax.experimental import pallas as pl
from jax.experimental.pallas import tpu as pltpu


# ----------------------------- Pallas kernel --------------------------------
def _stencil_kernel(s_ref, x_ref, o_ref, *, K: int, pad: int, L: int):
    """out[b, i] = sum_k s[k] * x[b, (i + k - pad) mod L]  (circular conv1d,
    cross-correlation, matching torch.nn.functional.conv1d after circular pad).
    """
    x = x_ref[...]                                    # (bm, L), single load
    acc = s_ref[pad] * x                              # tap aligned with output
    for k in range(K):                                # K is tiny -> static unroll
        if k == pad:
            continue
        shift = (pad - k) % L                         # static, nonnegative
        # jnp.roll semantics: rolled[i] = x[(i - shift) mod L] = x[(i+k-pad) mod L]
        acc = acc + s_ref[k] * pltpu.roll(x, shift=shift, axis=1)
    o_ref[...] = acc.astype(o_ref.dtype)              # one lane-dense store


def _pick_bm(B: int, L: int, itemsize: int = 4) -> int:
    """Row-block size: a multiple of 8 (sublanes) that divides B, sized for
    ~2 MiB input blocks (near the HBM roofline) while keeping the grid >= 2
    steps when B allows it (feeds both TensorCores on v7x).  The resulting
    double-buffered working set (2x in + 2x out) stays well under the 32 MiB
    scoped-VMEM default on v5e/v6e/v7x."""
    if B % 8 != 0:
        return B                                      # tiny/odd batch: one full block
    target_rows = max(8, (2 << 20) // (L * itemsize)) # ~2 MiB per input block
    bm = 8
    while bm * 2 <= min(B, target_rows) and B % (bm * 2) == 0:
        bm *= 2
    # Prefer >= 2 grid steps when B allows it (v7x has 2 TensorCores).
    if bm == B and B >= 16 and (B // 2) % 8 == 0:
        bm = B // 2
    return bm


def _fd_stencil_pallas(x2d, stencil):
    """x2d: (B, L) float32, stencil: (K,) float32 -> (B, L_out) float32."""
    B, L = x2d.shape
    K = int(stencil.shape[0])
    pad = K // 2

    bm = _pick_bm(B, L)
    nb = pl.cdiv(B, bm)

    kernel = functools.partial(_stencil_kernel, K=K, pad=pad, L=L)

    out = pl.pallas_call(
        kernel,
        out_shape=jax.ShapeDtypeStruct((B, L), x2d.dtype),
        grid_spec=pltpu.PrefetchScalarGridSpec(
            # Stencil taps are scalar-prefetched into SMEM once, before the grid.
            num_scalar_prefetch=1,
            grid=(nb,),
            in_specs=[pl.BlockSpec((bm, L), lambda i, s: (i, 0))],
            out_specs=pl.BlockSpec((bm, L), lambda i, s: (i, 0)),
        ),
        compiler_params=pltpu.CompilerParams(
            dimension_semantics=("parallel",)),
        cost_estimate=pl.CostEstimate(
            flops=2 * B * L * K,
            transcendentals=0,
            bytes_accessed=2 * B * L * 4 + 4 * K),
    )(stencil, x2d)

    if K % 2 == 0:
        # Even K: torch's circular conv yields L+1 outputs with
        # out[:, L] == out[:, 0]; append the wrapped column here so the kernel
        # output stays lane-dense (unmasked vst).
        out = jnp.concatenate([out, out[:, :1]], axis=1)
    return out


# ----------------------------- Module wrapper --------------------------------
class FDStencil:
    """JAX/Pallas port of the PyTorch fd_stencil module."""

    def __init__(self, stencil):
        self.stencil = jnp.asarray(stencil, jnp.float32)
        self.stencil_size = int(self.stencil.shape[0])

    def enforce_zero_sum(self):
        # Parameter-side (no-grad) update; plain JAX, not part of the forward.
        self.stencil = self.stencil - jnp.mean(self.stencil)

    def __call__(self, x):
        if x.ndim == 1:
            x2d = x[None, :]                           # (1, L)
        elif x.ndim == 2:
            x2d = x                                    # (B, L)
        elif x.ndim == 3 and x.shape[1] == 1:
            x2d = x[:, 0, :]                           # (B, 1, L) -> (B, L)
        else:
            raise ValueError("fd_stencil expects 1-D, 2-D, or (B, 1, L) input")
        # TODO(synk): for very long 1-D signals, fold L into sublanes
        # (reshape + seam fixup) to recover 8x sublane utilization.
        out2d = _fd_stencil_pallas(x2d, self.stencil)
        # torch: out.squeeze() drops the channel dim and any other size-1 dims.
        return jnp.squeeze(out2d)


# --------------------------------- main --------------------------------------
if __name__ == "__main__":
    key = jax.random.PRNGKey(0)
    k_sten, k_x, k_x1, k_sten_e = jax.random.split(key, 4)

    stencil_size = 5                 # typical odd FD stencil
    B, L = 8, 256                    # >=8 rows (sublanes), L multiple of 128
    pad = stencil_size // 2

    stencil = jax.random.normal(k_sten, (stencil_size,), jnp.float32)
    x = jax.random.normal(k_x, (B, L), jnp.float32)

    model = FDStencil(stencil)

    # --- 2-D branch -----------------------------------------------------------
    out = model(x)                   # (B, L)
    jax.block_until_ready(out)

    # Independent reference: circular pad + XLA conv (cross-correlation,
    # matching torch.nn.functional.conv1d).
    xp = jnp.concatenate([x[:, L - pad:], x, x[:, :pad]], axis=1)
    ref = jax.lax.conv_general_dilated(
        xp[:, None, :], stencil[None, None, :],
        window_strides=(1,), padding="VALID",
        dimension_numbers=("NCH", "OIH", "NCH"))[:, 0, :]
    assert out.shape == ref.shape
    assert jnp.allclose(out, ref, atol=1e-4, rtol=1e-4)

    # --- 1-D branch (torch: unsqueeze -> conv -> squeeze back to 1-D) --------
    x1 = jax.random.normal(k_x1, (L,), jnp.float32)
    out1 = model(x1)
    jax.block_until_ready(out1)
    xp1 = jnp.concatenate([x1[L - pad:], x1, x1[:pad]])
    ref1 = jax.lax.conv_general_dilated(
        xp1[None, None, :], stencil[None, None, :],
        window_strides=(1,), padding="VALID",
        dimension_numbers=("NCH", "OIH", "NCH"))[0, 0, :]
    assert out1.shape == (L,)
    assert jnp.allclose(out1, ref1, atol=1e-4, rtol=1e-4)

    # --- even-K path (L_out = L+1, wrapped final column) ----------------------
    sten_e = jax.random.normal(k_sten_e, (4,), jnp.float32)
    model_e = FDStencil(sten_e)
    out_e = model_e(x)
    jax.block_until_ready(out_e)
    pad_e = 2
    xpe = jnp.concatenate([x[:, L - pad_e:], x, x[:, :pad_e]], axis=1)
    ref_e = jax.lax.conv_general_dilated(
        xpe[:, None, :], sten_e[None, None, :],
        window_strides=(1,), padding="VALID",
        dimension_numbers=("NCH", "OIH", "NCH"))[:, 0, :]
    assert out_e.shape == ref_e.shape
    assert jnp.allclose(out_e, ref_e, atol=1e-4, rtol=1e-4)

    # --- enforce_zero_sum utility (parameter update, outside the kernel) -----
    model.enforce_zero_sum()
    assert abs(float(jnp.sum(model.stencil))) < 1e-3

    print("KERNEL_OK")
</pallas_src>

<mosaic_0001>
module attributes {stable_mosaic.version = 11 : i64} {
  func.func @_stencil_kernel(%arg0: i32, %arg1: memref<5xf32, #tpu.memory_space<smem>>, %arg2: memref<8x256xf32, #tpu.memory_space<vmem>>, %arg3: memref<8x256xf32, #tpu.memory_space<vmem>>) attributes {dimension_semantics = [#tpu.dimension_semantics<parallel>], iteration_bounds = array<i64: 1>, scalar_prefetch = 1 : i64, scratch_operands = 0 : i64, tpu.core_type = #tpu.core_type<tc>, window_params = [{transform_indices = @transform_0, window_bounds = array<i64: 8, 256>}, {transform_indices = @transform_1, window_bounds = array<i64: 8, 256>}]} {
    %c0 = arith.constant 0 : index
    %c0_0 = arith.constant 0 : index
    %0 = vector.load %arg2[%c0, %c0_0] : memref<8x256xf32, #tpu.memory_space<vmem>>, vector<8x256xf32>
    %c2 = arith.constant 2 : index
    %1 = memref.load %arg1[%c2] : memref<5xf32, #tpu.memory_space<smem>>
    %2 = vector.broadcast %1 : f32 to vector<8x256xf32>
    %3 = arith.mulf %2, %0 : vector<8x256xf32>
    %c0_1 = arith.constant 0 : index
    %4 = memref.load %arg1[%c0_1] : memref<5xf32, #tpu.memory_space<smem>>
    %c2_i32 = arith.constant 2 : i32
    %5 = tpu.dynamic_rotate %0 by %c2_i32 dim 1 : vector<8x256xf32>, i32 -> vector<8x256xf32>
    %6 = vector.broadcast %4 : f32 to vector<8x256xf32>
    %7 = arith.mulf %6, %5 : vector<8x256xf32>
    %8 = arith.addf %3, %7 : vector<8x256xf32>
    %c1 = arith.constant 1 : index
    %9 = memref.load %arg1[%c1] : memref<5xf32, #tpu.memory_space<smem>>
    %c1_i32 = arith.constant 1 : i32
    %10 = tpu.dynamic_rotate %0 by %c1_i32 dim 1 : vector<8x256xf32>, i32 -> vector<8x256xf32>
    %11 = vector.broadcast %9 : f32 to vector<8x256xf32>
    %12 = arith.mulf %11, %10 : vector<8x256xf32>
    %13 = arith.addf %8, %12 : vector<8x256xf32>
    %c3 = arith.constant 3 : index
    %14 = memref.load %arg1[%c3] : memref<5xf32, #tpu.memory_space<smem>>
    %c255_i32 = arith.constant 255 : i32
    %15 = tpu.dynamic_rotate %0 by %c255_i32 dim 1 : vector<8x256xf32>, i32 -> vector<8x256xf32>
    %16 = vector.broadcast %14 : f32 to vector<8x256xf32>
    %17 = arith.mulf %16, %15 : vector<8x256xf32>
    %18 = arith.addf %13, %17 : vector<8x256xf32>
    %c4 = arith.constant 4 : index
    %19 = memref.load %arg1[%c4] : memref<5xf32, #tpu.memory_space<smem>>
    %c254_i32 = arith.constant 254 : i32
    %20 = tpu.dynamic_rotate %0 by %c254_i32 dim 1 : vector<8x256xf32>, i32 -> vector<8x256xf32>
    %21 = vector.broadcast %19 : f32 to vector<8x256xf32>
    %22 = arith.mulf %21, %20 : vector<8x256xf32>
    %23 = arith.addf %18, %22 : vector<8x256xf32>
    %c0_2 = arith.constant 0 : index
    %c0_3 = arith.constant 0 : index
    %24 = vector.load %arg3[%c0_2, %c0_3] : memref<8x256xf32, #tpu.memory_space<vmem>>, vector<8x256xf32>
    tpu.vector_store %arg3[%c0_2, %c0_3], %23 {strides = array<i32>} : memref<8x256xf32, #tpu.memory_space<vmem>>, vector<8x256xf32>,
    return
  }
  func.func @transform_0(%arg0: i32, %arg1: memref<5xf32, #tpu.memory_space<smem>>) -> (i32, i32) {
    %c0_i32 = arith.constant 0 : i32
    %c0_i32_0 = arith.constant 0 : i32
    return %arg0, %c0_i32 : i32, i32
  }
  func.func @transform_1(%arg0: i32, %arg1: memref<5xf32, #tpu.memory_space<smem>>) -> (i32, i32) {
    %c0_i32 = arith.constant 0 : i32
    %c0_i32_0 = arith.constant 0 : i32
    return %arg0, %c0_i32 : i32, i32
  }
}

</mosaic_0001>

<bundles_post_ra>
// kernel: tpu_custom_call.1
= control target key start
LH: loop header
LB: loop body
LE: loop exit
PB: predicated region body
PF: predicated region fallthrough
CT: control target
= control target key end

     0   :  { %s238_s0 = inlined_call_operand.hbm [shape: f32[5], index: 0, kind: input, shape index: {}]   ;;  %s239_s1 = inlined_call_operand.hbm [shape: f32[8,256], index: 1, kind: input, shape index: {}]   ;;  %s240_s2 = inlined_call_operand.hbm [shape: f32[8,256], index: 2, kind: output, shape index: {}]  }
   0x1   :  { %s114_s11 = scalar_lea.hbm %s238_s0, 16 }
   0x2   :  { %p115_p0 = scmp.ne.s32.totalorder %s238_s0, %s114_s11  ;;  %p118_p1 = scmp.lt.u32.totalorder %s114_s11, %s238_s0 }
   0x4   :  { %p120_p2 = pnand %p118_p1, %p115_p0 }
   0x6   :  { %123 = shalt.err (!%p120_p2)  }
   0x7   :  { %s174_s16 = smov [#allocation3]  }
   0x8   :  { %8 = dma.hbm_to_smem %s238_s0, 16, %s174_s16, [#allocation2] }
   0x9   :  { %168 = dma.done.wait [#allocation2], 16 }
   0xa   :  { %169 = vsyncadd [#allocation2], 4294967280 }
   0xb   :  { %10 = sfence }
   0xc   :  { %11 = vsyncpa [#allocation5], 0 }
   0xd   :  { %12 = vsyncpa [#allocation6], 0  ;;  %s175_s19 = smov [#allocation4]   ;;  %s124_s23 = scalar_lea.hbm %s239_s1, 256 }
   0xe   :  { %s19_s20 = sshll.u32 %s175_s19, 4  ;;  %p125_p3 = scmp.ne.s32.totalorder %s239_s1, %s124_s23  ;;  %s20_s20 = int_to_ptr.vmem [resolvable:$true] %s19_s20 }
   0xf   :  { %p128_p4 = scmp.lt.u32.totalorder %s124_s23, %s239_s1 }
  0x11   :  { %p130_p5 = pnand %p128_p4, %p125_p3 }
  0x13   :  { %133 = shalt.err (!%p130_p5)
}
  0x14   :  { %s134_s0 = scalar_lea.vmem %s20_s20, 256  ;;  %p139_p7 = scmp.lt.s32.totalorder %s20_s20, %s20_s20 }
  0x15   :  { %p135_p6 = scmp.ne.s32.totalorder %s20_s20, %s134_s0  ;;  %p140_p8 = scmp.lt.s32.totalorder %s134_s0, %s134_s0 }
  0x17   :  { %p141_p9 = por %p140_p8, %p139_p7 }
  0x19   :  { %p142_p10 = pnand %p141_p9, %p135_p6 }
  0x1b   :  { %145 = shalt.err (!%p142_p10)
}
  0x1c   :  { %22 = dma.hbm_to_vmem [thread:$0]  %s239_s1, 256, %s20_s20, [#allocation5]  }
  0x1d   :  { %170 = dma.done.wait [#allocation5], 256  }
  0x1e   :  { %171 = vsyncadd [#allocation5], 4294967040  ;;  %v26_v0 = vld [vmem:[#allocation4] sm:$0xff]  ;;  %s176_s30 = smov 1   ;;  %s177_s3 = smov 2   ;;  %v27_v1 = vld [vmem:[#allocation4 + $0x8] sm:$0xff]  ;;  %v37_v2 = vlaneseq }
  0x1f   :  { %48 = vrot.lane.b32.xlu1 %v26_v0, %s176_s30  ;;  %33 = vrot.lane.b32.xlu0 %v26_v0, %s177_s3  ;;  %s178_s4 = smov 127   ;;  %s179_s5 = smov 126  }
  0x20   :  { %s103_s6 = sld [smem:[#allocation3 + $0x2]]  ;;  %s32_s7 = sld [smem:[#allocation3]]  ;;  %v38_v3 = vand.u32 127, %v37_v2 }
  0x21   :  { %s104_s1 = sld [smem:[#allocation3 + $0x1]]  ;;  %s220_s8 = sld [smem:[#allocation3 + $0x3]] }
  0x22   :  { %vm52_vm0 = vcmp.lt.s32.totalorder %v38_v3, 1  ;;  %vm39_vm1 = vcmp.lt.s32.totalorder %v38_v3, 2  ;;  %s222_s9 = sld [smem:[#allocation3 + $0x4]]  ;;  %vm65_vm2 = vcmp.lt.s32.totalorder %v38_v3, 127  ;;  %vm78_vm3 = vcmp.lt.s32.totalorder %v38_v3, 126  ;;  %s180_s10 = smov [#allocation7]  }
  0x23   :  { %50 = vrot.lane.b32.xlu1 %v27_v1, %s176_s30  ;;  %35 = vrot.lane.b32.xlu0 %v27_v1, %s177_s3  ;;  %s94_s11 = sshll.u32 %s180_s10, 4  ;;  %s95_s11 = int_to_ptr.vmem [resolvable:$true] %s94_s11 }
  0x24   :  { %s146_s12 = scalar_lea.vmem %s95_s11, 256  ;;  %p151_p12 = scmp.lt.s32.totalorder %s95_s11, %s95_s11 }
  0x25   :  { %p147_p11 = scmp.ne.s32.totalorder %s95_s11, %s146_s12  ;;  %p152_p13 = scmp.lt.s32.totalorder %s146_s12, %s146_s12 }
  0x26   :  { %v29_v6 = vstv %s103_s6  ;;  %v42_v7 = vstv %s32_s7 }
  0x27   :  { %63 = vrot.lane.b32.xlu1 %v27_v1, %s178_s4  ;;  %61 = vrot.lane.b32.xlu0 %v26_v0, %s178_s4  ;;  %v55_v8 = vstv %s104_s1  ;;  %v31_v10 = vmul.f32 %v29_v6, %v27_v1  ;;  %v30_v12 = vmul.f32 %v29_v6, %v26_v0  ;;  %v68_v19 = vstv %s220_s8  ;;  %p153_p0 = por %p152_p13, %p151_p12 }
  0x28   :  { %v81_v32 = vstv %s222_s9 }
  0x29   :  { %p154_p1 = pnand %p153_p0, %p147_p11 }
  0x2b   :  { %76 = vrot.lane.b32.xlu1 %v27_v1, %s179_s5  ;;  %74 = vrot.lane.b32.xlu0 %v26_v0, %s179_s5 }
  0x91   :  { %v49_v4 = vpop.permute.xlu1 %48  ;;  %v34_v5 = vpop.permute.xlu0 %33 }
  0x95   :  { %v51_v9 = vpop.permute.xlu1 %50  ;;  %v36_v11 = vpop.permute.xlu0 %35 }
  0x96   :  { %v53_v13 = vsel %vm52_vm0, %v49_v4, %v51_v9  ;;  %v54_v14 = vsel %vm52_vm0, %v51_v9, %v49_v4  ;;  %v40_v15 = vsel %vm39_vm1, %v34_v5, %v36_v11  ;;  %v41_v16 = vsel %vm39_vm1, %v36_v11, %v34_v5 }
  0x97   :  { %v43_v17 = vmul.f32 %v42_v7, %v41_v16  ;;  %v44_v18 = vmul.f32 %v42_v7, %v40_v15  ;;  %v56_v20 = vmul.f32 %v55_v8, %v54_v14  ;;  %v57_v21 = vmul.f32 %v55_v8, %v53_v13 }
  0x99   :  { %v45_v22 = vadd.f32 %v43_v17, %v30_v12  ;;  %v46_v23 = vadd.f32 %v44_v18, %v31_v10  ;;  %v64_v24 = vpop.permute.xlu1 %63  ;;  %v62_v25 = vpop.permute.xlu0 %61 }
  0x9a   :  { %v66_v26 = vsel %vm65_vm2, %v62_v25, %v64_v24  ;;  %v67_v27 = vsel %vm65_vm2, %v64_v24, %v62_v25 }
  0x9b   :  { %v59_v28 = vadd.f32 %v57_v21, %v46_v23  ;;  %v58_v29 = vadd.f32 %v56_v20, %v45_v22  ;;  %v69_v30 = vmul.f32 %v68_v19, %v66_v26  ;;  %v70_v31 = vmul.f32 %v68_v19, %v67_v27 }
  0x9d   :  { %v77_v33 = vpop.permute.xlu1 %76  ;;  %v75_v34 = vpop.permute.xlu0 %74  ;;  %v71_v37 = vadd.f32 %v69_v30, %v58_v29  ;;  %v72_v38 = vadd.f32 %v70_v31, %v59_v28 }
  0x9e   :  { %v79_v35 = vsel %vm78_vm3, %v75_v34, %v77_v33  ;;  %v80_v36 = vsel %vm78_vm3, %v77_v33, %v75_v34 }
  0x9f   :  { %v82_v39 = vmul.f32 %v81_v32, %v79_v35  ;;  %v83_v40 = vmul.f32 %v81_v32, %v80_v36 }
  0xa1   :  { %v84_v41 = vadd.f32 %v82_v39, %v71_v37  ;;  %v85_v42 = vadd.f32 %v83_v40, %v72_v38 }
  0xa3   :  { %86 = vst [vmem:[#allocation7] sm:$0xff] %v84_v41  ;;  %87 = vst [vmem:[#allocation7 + $0x8] sm:$0xff] %v85_v42 }
  0xa4   :  { %157 = shalt.err (!%p154_p1)
}
  0xa5   :  { %s158_s15 = scalar_lea.hbm %s240_s2, 256 }
  0xa6   :  { %p159_p2 = scmp.ne.s32.totalorder %s240_s2, %s158_s15  ;;  %p162_p3 = scmp.lt.u32.totalorder %s158_s15, %s240_s2 }
  0xa8   :  { %p164_p4 = pnand %p162_p3, %p159_p2 }
  0xaa   :  { %167 = shalt.err (!%p164_p4)
}
  0xab   :  { %97 = dma.vmem_to_hbm [thread:$0]  %s95_s11, 256, %s240_s2, [#allocation6]  }
  0xac   :  { %172 = dma.done.wait [#allocation6], 256  }
  0xad   :  { %173 = vsyncadd [#allocation6], 4294967040 }
  0xae   :  { %101 = vsyncpa [#allocation5], 1 }
  0xaf   :  { %102 = vsyncpa [#allocation6], 1 }

</bundles_post_ra>
